<compile_context>
chip_gen: v7x
topology: tpu7x:2x2x1
jax: 0.10.0
libtpu: 0.0.40
codegen_flags: <defaults>
</compile_context>

<pallas_src>
import jax
import jax.numpy as jnp
from jax.experimental import pallas as pl
from jax.experimental.pallas import tpu as pltpu


# ----------------------------- Pallas kernel -------------------------------- #
def actnorm_kernel(z_ref, scale_ref, bias_ref, out_ref):
    # z_ref / out_ref    : (tile_r, tile_t) block of the flattened (B*C, T) slab
    # scale_ref/bias_ref : (tile_r, 1) per-row (= per-channel) parameters (f32)
    # The (tile_r, 1) -> (tile_r, tile_t) broadcast lowers to a per-sublane lane
    # splat (no materialized temporary), so the body is one fused multiply-add
    # per vreg on the VPU -- the kernel is purely HBM-bandwidth bound.
    x = z_ref[...].astype(jnp.float32)
    out_ref[...] = (x * scale_ref[...] + bias_ref[...]).astype(out_ref.dtype)


# ----------------------------- tile selection -------------------------------- #
def _round_up(x, m):
    return -(-x // m) * m


def _choose_blocks(R, T, itemsize, max_block_bytes):
    """Pick a (tile_r, tile_t) block for the flattened (R, T) = (B*C, T) tensor.

    tile_t is T or a multiple of 128; tile_r is R or a multiple of 8 (the
    (8,128) block-shape rule).  Ragged edges are handled by cdiv grids with
    masked last blocks, so nothing here ever exceeds the byte budget.
    """
    budget = max(8 * 128, max_block_bytes // max(itemsize, 1))  # elems / block

    # Time (lane) axis first: full T if it fits alongside >= 8 rows, otherwise
    # the largest multiple of 128 that does.
    lane_cap = max(128, (budget // 8) // 128 * 128)
    tile_t = T if T <= lane_cap else lane_cap

    # Row (sublane) axis: fill the remaining budget in multiples of 8.
    row_cap = max(8, (budget // tile_t) // 8 * 8)
    tile_r = R if R <= row_cap else row_cap

    # v7x megacore: if everything landed in a single grid step but the problem
    # is big enough to matter, split the rows so both TensorCores get work.
    if pl.cdiv(R, tile_r) * pl.cdiv(T, tile_t) == 1 and R * T * itemsize > (256 << 10):
        if R >= 16:
            tile_r = _round_up((R + 1) // 2, 8)
        elif T > 256:
            tile_t = _round_up((T + 1) // 2, 128)
    return tile_r, tile_t


# ------------------------------- wrapper ------------------------------------ #
def actnorm_apply(z, log_scale, bias, *, max_block_bytes=4 << 20, donate_z=False):
    """z * exp(log_scale) + bias on an NCT tensor via a Pallas TPU kernel."""
    B, C, T = z.shape
    R = B * C
    itemsize = jnp.dtype(z.dtype).itemsize
    tile_r, tile_t = _choose_blocks(R, T, itemsize, max_block_bytes)
    grid = (pl.cdiv(R, tile_r), pl.cdiv(T, tile_t))

    # Precompute exp(log_scale) once (tiny C-element op) -> kernel is one FMA.
    scale = jnp.exp(jnp.asarray(log_scale, jnp.float32).reshape(C))
    b = jnp.asarray(bias, jnp.float32).reshape(C)
    # Row r of the flattened (B*C, T) slab is channel r % C.
    scale_r = jnp.tile(scale, B).reshape(R, 1)
    bias_r = jnp.tile(b, B).reshape(R, 1)

    z2 = z.reshape(R, T)  # free metadata reshape, no host-side data movement

    z_spec = pl.BlockSpec((tile_r, tile_t), lambda r, t: (r, t))
    p_spec = pl.BlockSpec((tile_r, 1), lambda r, t: (r, 0))

    out = pl.pallas_call(
        actnorm_kernel,
        out_shape=jax.ShapeDtypeStruct((R, T), z.dtype),
        grid_spec=pltpu.PrefetchScalarGridSpec(
            num_scalar_prefetch=0,
            grid=grid,
            in_specs=[z_spec, p_spec, p_spec],
            out_specs=z_spec),
        compiler_params=pltpu.CompilerParams(
            # every output block is independent -> both axes parallel (megacore)
            dimension_semantics=("parallel", "parallel"),
            # 2x-in + 2x-out double buffers at <=4 MiB blocks stay well under
            # this on every generation (v5e default scoped limit is only 16 MiB)
            vmem_limit_bytes=32 << 20),
        # Optional: alias z to the output (saves one B*C*T HBM allocation when
        # the caller donates z). Off by default so eager callers keep z valid.
        input_output_aliases=({0: 0} if donate_z else {}),
    )(z2, scale_r, bias_r)
    return out.reshape(B, C, T)


def actnorm_initialize(z, eps=1e-5):
    # TODO(synk): PyTorch's init is a one-time stateful parameter write (plus a
    # print); the statistics themselves are computed here with plain JAX and
    # the new parameters are returned to the caller.
    m = jnp.mean(z, axis=(0, 2))
    std = jnp.std(z, axis=(0, 2), ddof=1)        # torch.std is unbiased by default
    logs = jnp.log(std + eps)
    return -logs, -m * jnp.exp(-logs)            # (log_scale, bias), each (C,)


def actnorm_forward(z, log_df_dz, log_scale, bias, initialized=True, eps=1e-5,
                    **apply_kwargs):
    if not initialized:
        log_scale, bias = actnorm_initialize(z, eps)
    z_out = actnorm_apply(z, log_scale, bias, **apply_kwargs)
    # Log-det term is data independent: reduce the C-element parameter here.
    # Matches the module exactly: log_df_dz += sum(log_scale) (no factor of T).
    return z_out, log_df_dz + jnp.sum(log_scale), log_scale, bias


# ----------------------------- pure-JAX ref ---------------------------------- #
def ref_forward(z, log_df_dz, log_scale, bias):
    C = z.shape[1]
    ls = jnp.asarray(log_scale).reshape(1, C, 1)
    b = jnp.asarray(bias).reshape(1, C, 1)
    return z * jnp.exp(ls) + b, log_df_dz + jnp.sum(log_scale)


# --------------------------------- main -------------------------------------- #
if __name__ == "__main__":
    key = jax.random.PRNGKey(0)
    k1, k2, k3 = jax.random.split(key, 3)

    # Case 1: the module's first call (initialized=False -> data-dependent init),
    # small NCT shape consistent with the module.
    B, C, T = 2, 4, 16
    z = jax.random.normal(k1, (B, C, T), jnp.float32)
    z_out, ldj, log_scale, bias = actnorm_forward(
        z, jnp.float32(0.0), None, None, initialized=False)
    jax.block_until_ready((z_out, ldj))
    z_ref, ldj_ref = ref_forward(z, jnp.float32(0.0), log_scale, bias)
    assert z_out.shape == z.shape and z_out.dtype == z.dtype
    assert jnp.allclose(z_out, z_ref, atol=1e-5, rtol=1e-5), "z mismatch (case 1)"
    assert jnp.allclose(ldj, ldj_ref, atol=1e-5, rtol=1e-5), "ldj mismatch (case 1)"

    # Case 2: steady-state call with a non-128-divisible T (this shape used to
    # take the unbounded full-T fallback); now handled with a bounded block and
    # a 2-step row grid (megacore-friendly).
    B2, C2, T2 = 4, 80, 1000
    z2 = jax.random.normal(k2, (B2, C2, T2), jnp.float32)
    ls2 = 0.1 * jax.random.normal(jax.random.PRNGKey(1), (C2,), jnp.float32)
    b2 = 0.1 * jax.random.normal(jax.random.PRNGKey(2), (C2,), jnp.float32)
    z2_out, ldj2, _, _ = actnorm_forward(z2, jnp.float32(0.5), ls2, b2)
    jax.block_until_ready((z2_out, ldj2))
    z2_ref, ldj2_ref = ref_forward(z2, jnp.float32(0.5), ls2, b2)
    assert z2_out.shape == z2.shape and z2_out.dtype == z2.dtype
    assert jnp.allclose(z2_out, z2_ref, atol=1e-5, rtol=1e-5), "z mismatch (case 2)"
    assert jnp.allclose(ldj2, ldj2_ref, atol=1e-4, rtol=1e-5), "ldj mismatch (case 2)"

    # Case 3: force a small block budget so the kernel exercises the cdiv grid
    # with a masked ragged last time block and a multi-row, multi-time grid.
    B3, C3, T3 = 2, 80, 3000
    z3 = jax.random.normal(k3, (B3, C3, T3), jnp.float32)
    ls3 = 0.05 * jax.random.normal(jax.random.PRNGKey(3), (C3,), jnp.float32)
    b3 = 0.05 * jax.random.normal(jax.random.PRNGKey(4), (C3,), jnp.float32)
    z3_out, ldj3, _, _ = actnorm_forward(z3, jnp.float32(-1.0), ls3, b3,
                                         max_block_bytes=64 << 10)
    jax.block_until_ready((z3_out, ldj3))
    z3_ref, ldj3_ref = ref_forward(z3, jnp.float32(-1.0), ls3, b3)
    assert jnp.allclose(z3_out, z3_ref, atol=1e-5, rtol=1e-5), "z mismatch (case 3)"
    assert jnp.allclose(ldj3, ldj3_ref, atol=1e-4, rtol=1e-5), "ldj mismatch (case 3)"

    print("KERNEL_OK")
</pallas_src>

<mosaic_0001>
module attributes {stable_mosaic.version = 11 : i64} {
  func.func @actnorm_kernel(%arg0: i32, %arg1: i32, %arg2: memref<8x16xf32, #tpu.memory_space<vmem>>, %arg3: memref<8x1xf32, #tpu.memory_space<vmem>>, %arg4: memref<8x1xf32, #tpu.memory_space<vmem>>, %arg5: memref<8x16xf32, #tpu.memory_space<vmem>>) attributes {dimension_semantics = [#tpu.dimension_semantics<parallel>, #tpu.dimension_semantics<parallel>], iteration_bounds = array<i64: 1, 1>, scalar_prefetch = 0 : i64, scratch_operands = 0 : i64, tpu.core_type = #tpu.core_type<tc>, window_params = [{transform_indices = @transform_0, window_bounds = array<i64: 8, 16>}, {transform_indices = @transform_1, window_bounds = array<i64: 8, 1>}, {transform_indices = @transform_2, window_bounds = array<i64: 8, 1>}, {transform_indices = @transform_3, window_bounds = array<i64: 8, 16>}]} {
    %c0 = arith.constant 0 : index
    %c0_0 = arith.constant 0 : index
    %0 = vector.load %arg2[%c0, %c0_0] : memref<8x16xf32, #tpu.memory_space<vmem>>, vector<8x16xf32>
    %c0_1 = arith.constant 0 : index
    %c0_2 = arith.constant 0 : index
    %1 = vector.load %arg3[%c0_1, %c0_2] : memref<8x1xf32, #tpu.memory_space<vmem>>, vector<8x1xf32>
    %2 = vector.broadcast %1 : vector<8x1xf32> to vector<8x16xf32>
    %3 = arith.mulf %0, %2 : vector<8x16xf32>
    %c0_3 = arith.constant 0 : index
    %c0_4 = arith.constant 0 : index
    %4 = vector.load %arg4[%c0_3, %c0_4] : memref<8x1xf32, #tpu.memory_space<vmem>>, vector<8x1xf32>
    %5 = vector.broadcast %4 : vector<8x1xf32> to vector<8x16xf32>
    %6 = arith.addf %3, %5 : vector<8x16xf32>
    %c0_5 = arith.constant 0 : index
    %c0_6 = arith.constant 0 : index
    %7 = vector.load %arg5[%c0_5, %c0_6] : memref<8x16xf32, #tpu.memory_space<vmem>>, vector<8x16xf32>
    tpu.vector_store %arg5[%c0_5, %c0_6], %6 {strides = array<i32>} : memref<8x16xf32, #tpu.memory_space<vmem>>, vector<8x16xf32>,
    return
  }
  func.func @transform_0(%arg0: i32, %arg1: i32) -> (i32, i32) {
    %c0_i32 = arith.constant 0 : i32
    return %arg0, %arg1 : i32, i32
  }
  func.func @transform_1(%arg0: i32, %arg1: i32) -> (i32, i32) {
    %c0_i32 = arith.constant 0 : i32
    %c0_i32_0 = arith.constant 0 : i32
    return %arg0, %c0_i32 : i32, i32
  }
  func.func @transform_2(%arg0: i32, %arg1: i32) -> (i32, i32) {
    %c0_i32 = arith.constant 0 : i32
    %c0_i32_0 = arith.constant 0 : i32
    return %arg0, %c0_i32 : i32, i32
  }
  func.func @transform_3(%arg0: i32, %arg1: i32) -> (i32, i32) {
    %c0_i32 = arith.constant 0 : i32
    return %arg0, %arg1 : i32, i32
  }
}

</mosaic_0001>

<bundles_post_ra>
// kernel: tpu_custom_call.1
= control target key start
LH: loop header
LB: loop body
LE: loop exit
PB: predicated region body
PF: predicated region fallthrough
CT: control target
= control target key end

     0   :  { %s116_s0 = inlined_call_operand.vmem [shape: f32[8,16], index: 0, kind: input, shape index: {}]   ;;  %s117_s1 = inlined_call_operand.vmem [shape: f32[8,1], index: 1, kind: input, shape index: {}]   ;;  %s118_s2 = inlined_call_operand.vmem [shape: f32[8,1], index: 2, kind: input, shape index: {}]   ;;  %s119_s3 = inlined_call_operand.hbm [shape: f32[8,16], index: 3, kind: output, shape index: {}]  }
   0x1   :  { %v16_v0 = vld [vmem:[%s117_s1] sm:$0xff] }
   0x2   :  { %8 = vsyncpa [#allocation3], 0  ;;  %v73_v1 = vmov 0   ;;  %v23_v2 = vld [vmem:[%s118_s2] sm:$0xff]  ;;  %s74_s18 = smov [#allocation2]   ;;  %vm30_vm0 = vcmask 130048  }
   0x3   :  { %48 = vset.pattern.permute.xlu0 %v73_v1  ;;  %v15_v4 = vld [vmem:[%s116_s0] sm:$0xff]  ;;  %s38_s19 = sshll.u32 %s74_s18, 4  ;;  %s39_s19 = int_to_ptr.vmem [resolvable:$true] %s38_s19 }
   0x4   :  { %19 = vperm.xlu0 %48, %v16_v0   ;;  %s49_s1 = scalar_lea.vmem %s39_s19, 128  ;;  %p54_p1 = scmp.lt.s32.totalorder %s39_s19, %s39_s19 }
   0x5   :  { %p50_p0 = scmp.ne.s32.totalorder %s39_s19, %s49_s1  ;;  %p55_p2 = scmp.lt.s32.totalorder %s49_s1, %s49_s1 }
   0x7   :  { %p56_p3 = por %p55_p2, %p54_p1 }
   0x8   :  { %26 = vperm.xlu0 %48, %v23_v2  }
   0x9   :  { %p57_p4 = pnand %p56_p3, %p50_p0 }
  0x83   :  { %v20_v3 = vpop.permute.xlu0 %19 }
  0x84   :  { %v22_v5 = vmul.f32 %v20_v3, %v15_v4 }
  0x87   :  { %v27_v6 = vpop.permute.xlu0 %26 }
  0x88   :  { %v29_v7 = vadd.f32 %v27_v6, %v22_v5 }
  0x8a   :  { %31 = vst.msk [vmem:[#allocation2] sm:$0xff] %vm30_vm0, %v29_v7 }
  0x8b   :  { %60 = shalt.err (!%p57_p4)
}
  0x8c   :  { %s61_s21 = scalar_lea.hbm %s119_s3, 128 }
  0x8d   :  { %p62_p5 = scmp.ne.s32.totalorder %s119_s3, %s61_s21  ;;  %p65_p6 = scmp.lt.u32.totalorder %s61_s21, %s119_s3 }
  0x8f   :  { %p67_p7 = pnand %p65_p6, %p62_p5 }
  0x91   :  { %70 = shalt.err (!%p67_p7)
}
  0x92   :  { %41 = dma.vmem_to_hbm [thread:$0]  %s39_s19, 128, %s119_s3, [#allocation3]  }
  0x93   :  { %71 = dma.done.wait [#allocation3], 128  }
  0x94   :  { %72 = vsyncadd [#allocation3], 4294967168 }
  0x95   :  { %45 = vsyncpa [#allocation3], 1 }

</bundles_post_ra>
